<compile_context>
chip_gen: v7x
topology: tpu7x:2x2x1
jax: 0.10.0
libtpu: 0.0.40
codegen_flags: <defaults>
</compile_context>

<pallas_src>
import jax
import jax.numpy as jnp
from jax.experimental import pallas as pl
from jax.experimental.pallas import tpu as pltpu

LANE = 128        # vreg lane width
SUBLANE = 8       # f32 sublane granularity (row-tile quantum)
TILE_R_MAX = 512  # rows per grid step upper bound (>=512 is ~85%+ of HBM roofline)


def _round_up(n, m):
    return ((n + m - 1) // m) * m


def _vmem_capacity_bytes():
    """Physical VMEM per core; falls back to the smallest (v7x) if unknown."""
    try:
        info = pltpu.get_tpu_info()
        cap = int(getattr(info, "vmem_capacity_bytes", 0))
        if cap > 0:
            return cap
    except Exception:
        pass
    return 64 * 1024 * 1024  # conservative fallback (v7x per-TensorCore)


def _ffnn_kernel_fused(x_ref, w1_ref, b1_ref, w2_ref, o_ref):
    """Whole hidden dim resident: o = tanh(x @ W1 + b1) @ W2, one pass."""
    x = x_ref[...].astype(w1_ref.dtype)                                  # no-op in f32 path
    h = jnp.dot(x, w1_ref[...], preferred_element_type=jnp.float32)      # MXU, f32 acc
    h = jnp.tanh(h + b1_ref[...])                                        # f32 bias + tanh (EUP)
    o = jnp.dot(h.astype(w2_ref.dtype), w2_ref[...],
                preferred_element_type=jnp.float32)
    o_ref[...] = o.astype(o_ref.dtype)


def _ffnn_kernel_hid_tiled(x_ref, w1_ref, b1_ref, w2_ref, o_ref, acc_ref):
    """Hidden dim tiled on the last grid axis: accumulate partial products."""
    k = pl.program_id(1)

    @pl.when(k == 0)
    def _():
        acc_ref[...] = jnp.zeros_like(acc_ref)

    x = x_ref[...].astype(w1_ref.dtype)
    h = jnp.dot(x, w1_ref[...], preferred_element_type=jnp.float32)
    h = jnp.tanh(h + b1_ref[...])
    acc_ref[...] += jnp.dot(h.astype(w2_ref.dtype), w2_ref[...],
                            preferred_element_type=jnp.float32)

    @pl.when(k == pl.num_programs(1) - 1)
    def _():
        o_ref[...] = acc_ref[...].astype(o_ref.dtype)


def ffnn_forward(xp, w1, b1, w2, *, tile_r, tile_h, vmem_limit, cost=None,
                 single_buffer_resident=True):
    """xp: (Rp, D) f32 with Rp % tile_r == 0; w1: (D, Hp); b1: (1, Hp) f32;
    w2: (Hp, Oe).  Hp is a multiple of 128, tile_h divides Hp."""
    Rp, D = xp.shape
    Hp = w1.shape[1]
    Oe = w2.shape[1]
    n_r = Rp // tile_r
    n_k = Hp // tile_h

    def resident(shape, index_map):
        # Grid-constant blocks don't need double buffering -> halve their VMEM.
        if n_k == 1 and single_buffer_resident:
            return pl.BlockSpec(shape, index_map, pipeline_mode=pl.Buffered(1))
        return pl.BlockSpec(shape, index_map)

    kernel = _ffnn_kernel_fused if n_k == 1 else _ffnn_kernel_hid_tiled
    scratch = [] if n_k == 1 else [pltpu.VMEM((tile_r, Oe), jnp.float32)]

    return pl.pallas_call(
        kernel,
        out_shape=jax.ShapeDtypeStruct((Rp, Oe), jnp.float32),
        grid=(n_r, n_k),
        in_specs=[
            pl.BlockSpec((tile_r, D), lambda i, k: (i, 0)),   # row-tiled activations (full D)
            resident((D, tile_h), lambda i, k: (0, k)),       # W1 hidden slice
            resident((1, tile_h), lambda i, k: (0, k)),       # bias hidden slice (f32)
            resident((tile_h, Oe), lambda i, k: (k, 0)),      # W2 hidden slice
        ],
        out_specs=pl.BlockSpec((tile_r, Oe), lambda i, k: (i, 0)),
        scratch_shapes=scratch,
        compiler_params=pltpu.CompilerParams(
            dimension_semantics=("parallel", "arbitrary"),   # rows across TCs; H is a reduction
            vmem_limit_bytes=int(vmem_limit),
        ),
        cost_estimate=cost,
    )(xp, w1, b1, w2)


class FFNNPallas:
    """JAX/Pallas port of the PyTorch FFNN module (Linear -> tanh -> Linear, no 2nd bias)."""

    def __init__(self, input_dim, hid_units, output_dim, key,
                 use_bf16=False, max_tile_h=None):
        self.input_dim = input_dim
        self.hid_units = hid_units
        self.output_dim = output_dim
        self.use_bf16 = use_bf16        # bf16 MXU operands (f32 acc / bias / tanh); off by default
        self.max_tile_h = max_tile_h    # optional cap to force the hidden-dim reduction path

        k1, k2, k3 = jax.random.split(key, 3)
        # nn.Linear-style init: U(-1/sqrt(fan_in), 1/sqrt(fan_in)); weights pre-transposed.
        lim1 = 1.0 / (input_dim ** 0.5)
        lim2 = 1.0 / (hid_units ** 0.5)
        self.w1_t = jax.random.uniform(k1, (input_dim, hid_units), jnp.float32, -lim1, lim1)
        self.b1 = jax.random.uniform(k2, (1, hid_units), jnp.float32, -lim1, lim1)
        self.w2_t = jax.random.uniform(k3, (hid_units, output_dim), jnp.float32, -lim2, lim2)

        # Hidden dim padded lane-dense once (zero W1 cols + zero bias -> tanh(0)=0 ->
        # zero contribution through zero-padded W2 rows).  Output padded only when
        # wide and unaligned; tiny outputs keep their true width (masked stores).
        self.h_pad = _round_up(hid_units, LANE)
        if output_dim < LANE or output_dim % LANE == 0:
            self.o_eff = output_dim
        else:
            self.o_eff = _round_up(output_dim, LANE)

        w_dtype = jnp.bfloat16 if use_bf16 else jnp.float32
        self.w1_p = jnp.pad(self.w1_t, ((0, 0), (0, self.h_pad - hid_units))).astype(w_dtype)
        self.b1_p = jnp.pad(self.b1, ((0, 0), (0, self.h_pad - hid_units)))  # bias stays f32
        self.w2_p = jnp.pad(
            self.w2_t,
            ((0, self.h_pad - hid_units), (0, self.o_eff - output_dim))).astype(w_dtype)

        cap = _vmem_capacity_bytes()
        self._vmem_limit = (cap * 3) // 4           # ~96 MiB v5e/v6e, ~48 MiB v7x
        self._tile_budget = (self._vmem_limit * 3) // 4   # headroom for compiler temps
        self._single_buffer_ok = True

    def _pick_tiles(self, r8):
        D, Hp, Oe = self.input_dim, self.h_pad, self.o_eff
        wb = 2 if self.use_bf16 else 4
        budget = self._tile_budget

        # Hidden tile: largest 128-multiple dividing Hp whose per-step weight
        # slices (double-buffered once H is tiled) fit in ~half the budget;
        # full Hp (resident, single-buffered weights) preferred.
        n128 = Hp // LANE
        tile_h = LANE
        for c in range(n128, 0, -1):
            if n128 % c:
                continue
            th = c * LANE
            if self.max_tile_h is not None and th > self.max_tile_h and c > 1:
                continue
            bufs = 1 if th == Hp else 2
            w_bytes = (D * th + th * Oe) * wb * bufs + th * 4
            if w_bytes <= budget // 2 or c == 1:
                tile_h = th
                break

        bufs = 1 if tile_h == Hp else 2
        w_bytes = (D * tile_h + tile_h * Oe) * wb * bufs + tile_h * 4
        # Row tile: double-buffered x / out tiles plus the f32 hidden temp.
        per_row = 2 * D * 4 + 2 * Oe * 4 + tile_h * 4
        avail = max(budget - w_bytes, SUBLANE * per_row)
        tile_r = min(TILE_R_MAX, r8, avail // per_row)
        tile_r = max(SUBLANE, (tile_r // SUBLANE) * SUBLANE)
        return tile_r, tile_h

    def __call__(self, x):
        # Linear applies to the last axis; flatten leading dims.
        lead = x.shape[:-1]
        x2d = x.reshape(-1, self.input_dim)
        R = x2d.shape[0]
        r8 = _round_up(max(R, 1), SUBLANE)

        tile_r, tile_h = self._pick_tiles(r8)
        n_steps = -(-r8 // tile_r)
        if n_steps == 1 and r8 >= 2 * SUBLANE:
            n_steps = 2                                # keep both v7x TensorCores busy
        tile_r = _round_up(-(-r8 // n_steps), SUBLANE)
        r_pad = tile_r * n_steps

        # Only row padding; no feature padding of x (full-D activation blocks).
        xp = x2d if r_pad == R else jnp.pad(x2d, ((0, r_pad - R), (0, 0)))

        cost = pl.CostEstimate(
            flops=int(2 * r_pad * (self.input_dim * self.h_pad + self.h_pad * self.o_eff)),
            transcendentals=int(r_pad * self.h_pad),
            bytes_accessed=int(xp.size * xp.dtype.itemsize
                               + self.w1_p.size * self.w1_p.dtype.itemsize
                               + self.b1_p.size * self.b1_p.dtype.itemsize
                               + self.w2_p.size * self.w2_p.dtype.itemsize
                               + r_pad * self.o_eff * 4),
        )

        kwargs = dict(tile_r=tile_r, tile_h=tile_h, vmem_limit=self._vmem_limit, cost=cost)
        try:
            out = ffnn_forward(xp, self.w1_p, self.b1_p, self.w2_p,
                               single_buffer_resident=self._single_buffer_ok, **kwargs)
        except Exception:
            if not self._single_buffer_ok:
                raise
            # Fallback for toolchains that reject single-buffer pipeline_mode.
            self._single_buffer_ok = False
            out = ffnn_forward(xp, self.w1_p, self.b1_p, self.w2_p,
                               single_buffer_resident=False, **kwargs)

        if r_pad != R or self.o_eff != self.output_dim:
            out = out[:R, : self.output_dim]
        return out.reshape(*lead, self.output_dim)


if __name__ == "__main__":
    key = jax.random.PRNGKey(0)
    k_x, k_p1, k_p2 = jax.random.split(key, 3)

    batch, seq, input_dim, hid_units, output_dim = 2, 8, 16, 32, 4
    x = jax.random.normal(k_x, (batch, seq, input_dim), jnp.float32)
    x2d = x.reshape(-1, input_dim)

    # Path 1: resident (single-buffered) weights, fused single-pass kernel.
    model = FFNNPallas(input_dim, hid_units, output_dim, k_p1)
    y = jax.block_until_ready(model(x))
    y_ref = (jnp.tanh(x2d @ model.w1_t + model.b1) @ model.w2_t).reshape(batch, seq, output_dim)
    assert y.shape == (batch, seq, output_dim)
    assert jnp.allclose(y, y_ref, atol=1e-5, rtol=1e-5)

    # Path 2: hidden-dim reduction axis (VMEM accumulator), forced by capping tile_h.
    model2 = FFNNPallas(input_dim, 256, output_dim, k_p2, max_tile_h=128)
    y2 = jax.block_until_ready(model2(x))
    y2_ref = (jnp.tanh(x2d @ model2.w1_t + model2.b1) @ model2.w2_t).reshape(batch, seq, output_dim)
    assert y2.shape == (batch, seq, output_dim)
    assert jnp.allclose(y2, y2_ref, atol=1e-4, rtol=1e-4)

    print("KERNEL_OK")
</pallas_src>

<mosaic_0001>
module attributes {stable_mosaic.version = 11 : i64} {
  func.func @_ffnn_kernel_fused(%arg0: i32, %arg1: i32, %arg2: memref<8x16xf32, #tpu.memory_space<vmem>>, %arg3: memref<16x128xf32, #tpu.memory_space<vmem>>, %arg4: memref<1x128xf32, #tpu.memory_space<vmem>>, %arg5: memref<128x4xf32, #tpu.memory_space<vmem>>, %arg6: memref<8x4xf32, #tpu.memory_space<vmem>>) attributes {dimension_semantics = [#tpu.dimension_semantics<parallel>, #tpu.dimension_semantics<arbitrary>], iteration_bounds = array<i64: 2, 1>, scalar_prefetch = 0 : i64, scratch_operands = 0 : i64, tpu.core_type = #tpu.core_type<tc>, window_params = [{transform_indices = @transform_0, window_bounds = array<i64: 8, 16>}, {pipeline_mode = #tpu.pipeline_mode<synchronous>, transform_indices = @transform_1, window_bounds = array<i64: 16, 128>}, {pipeline_mode = #tpu.pipeline_mode<synchronous>, transform_indices = @transform_2, window_bounds = array<i64: 1, 128>}, {pipeline_mode = #tpu.pipeline_mode<synchronous>, transform_indices = @transform_3, window_bounds = array<i64: 128, 4>}, {transform_indices = @transform_4, window_bounds = array<i64: 8, 4>}]} {
    %c0 = arith.constant 0 : index
    %c0_0 = arith.constant 0 : index
    %0 = vector.load %arg2[%c0, %c0_0] : memref<8x16xf32, #tpu.memory_space<vmem>>, vector<8x16xf32>
    %c0_1 = arith.constant 0 : index
    %c0_2 = arith.constant 0 : index
    %1 = vector.load %arg3[%c0_1, %c0_2] : memref<16x128xf32, #tpu.memory_space<vmem>>, vector<16x128xf32>
    %cst = arith.constant dense<0.000000e+00> : vector<8x128xf32>
    %2 = tpu.matmul %0, %1, %cst {dimension_numbers = #tpu.dot_dimension_numbers<[1], [0], [0], [1], [0, 0, 1, 1], [], []>} : vector<8x16xf32>, vector<16x128xf32>, vector<8x128xf32> -> vector<8x128xf32>
    %c0_3 = arith.constant 0 : index
    %c0_4 = arith.constant 0 : index
    %3 = vector.load %arg4[%c0_3, %c0_4] : memref<1x128xf32, #tpu.memory_space<vmem>>, vector<1x128xf32>
    %4 = vector.broadcast %3 : vector<1x128xf32> to vector<8x128xf32>
    %5 = arith.addf %2, %4 : vector<8x128xf32>
    %6 = math.tanh %5 : vector<8x128xf32>
    %c0_5 = arith.constant 0 : index
    %c0_6 = arith.constant 0 : index
    %7 = vector.load %arg5[%c0_5, %c0_6] : memref<128x4xf32, #tpu.memory_space<vmem>>, vector<128x4xf32>
    %cst_7 = arith.constant dense<0.000000e+00> : vector<8x4xf32>
    %8 = tpu.matmul %6, %7, %cst_7 {dimension_numbers = #tpu.dot_dimension_numbers<[1], [0], [0], [1], [0, 0, 1, 1], [], []>} : vector<8x128xf32>, vector<128x4xf32>, vector<8x4xf32> -> vector<8x4xf32>
    %c0_8 = arith.constant 0 : index
    %c0_9 = arith.constant 0 : index
    %9 = vector.load %arg6[%c0_8, %c0_9] : memref<8x4xf32, #tpu.memory_space<vmem>>, vector<8x4xf32>
    tpu.vector_store %arg6[%c0_8, %c0_9], %8 {strides = array<i32>} : memref<8x4xf32, #tpu.memory_space<vmem>>, vector<8x4xf32>,
    return
  }
  func.func @transform_0(%arg0: i32, %arg1: i32) -> (i32, i32) {
    %c0_i32 = arith.constant 0 : i32
    %c0_i32_0 = arith.constant 0 : i32
    return %arg0, %c0_i32 : i32, i32
  }
  func.func @transform_1(%arg0: i32, %arg1: i32) -> (i32, i32) {
    %c0_i32 = arith.constant 0 : i32
    %c0_i32_0 = arith.constant 0 : i32
    return %c0_i32, %arg1 : i32, i32
  }
  func.func @transform_2(%arg0: i32, %arg1: i32) -> (i32, i32) {
    %c0_i32 = arith.constant 0 : i32
    %c0_i32_0 = arith.constant 0 : i32
    return %c0_i32, %arg1 : i32, i32
  }
  func.func @transform_3(%arg0: i32, %arg1: i32) -> (i32, i32) {
    %c0_i32 = arith.constant 0 : i32
    %c0_i32_0 = arith.constant 0 : i32
    return %arg1, %c0_i32 : i32, i32
  }
  func.func @transform_4(%arg0: i32, %arg1: i32) -> (i32, i32) {
    %c0_i32 = arith.constant 0 : i32
    %c0_i32_0 = arith.constant 0 : i32
    return %arg0, %c0_i32 : i32, i32
  }
}

module attributes {stable_mosaic.version = 11 : i64} {
  func.func @_ffnn_kernel_fused(%arg0: i32, %arg1: i32, %arg2: memref<8x16xf32, #tpu.memory_space<vmem>>, %arg3: memref<16x128xf32, #tpu.memory_space<vmem>>, %arg4: memref<1x128xf32, #tpu.memory_space<vmem>>, %arg5: memref<128x4xf32, #tpu.memory_space<vmem>>, %arg6: memref<8x4xf32, #tpu.memory_space<vmem>>) attributes {dimension_semantics = [#tpu.dimension_semantics<parallel>, #tpu.dimension_semantics<arbitrary>], iteration_bounds = array<i64: 2, 1>, scalar_prefetch = 0 : i64, scratch_operands = 0 : i64, tpu.core_type = #tpu.core_type<tc>, window_params = [{transform_indices = @transform_0, window_bounds = array<i64: 8, 16>}, {transform_indices = @transform_1, window_bounds = array<i64: 16, 128>}, {transform_indices = @transform_2, window_bounds = array<i64: 1, 128>}, {transform_indices = @transform_3, window_bounds = array<i64: 128, 4>}, {transform_indices = @transform_4, window_bounds = array<i64: 8, 4>}]} {
    %c0 = arith.constant 0 : index
    %c0_0 = arith.constant 0 : index
    %0 = vector.load %arg2[%c0, %c0_0] : memref<8x16xf32, #tpu.memory_space<vmem>>, vector<8x16xf32>
    %c0_1 = arith.constant 0 : index
    %c0_2 = arith.constant 0 : index
    %1 = vector.load %arg3[%c0_1, %c0_2] : memref<16x128xf32, #tpu.memory_space<vmem>>, vector<16x128xf32>
    %cst = arith.constant dense<0.000000e+00> : vector<8x128xf32>
    %2 = tpu.matmul %0, %1, %cst {dimension_numbers = #tpu.dot_dimension_numbers<[1], [0], [0], [1], [0, 0, 1, 1], [], []>} : vector<8x16xf32>, vector<16x128xf32>, vector<8x128xf32> -> vector<8x128xf32>
    %c0_3 = arith.constant 0 : index
    %c0_4 = arith.constant 0 : index
    %3 = vector.load %arg4[%c0_3, %c0_4] : memref<1x128xf32, #tpu.memory_space<vmem>>, vector<1x128xf32>
    %4 = vector.broadcast %3 : vector<1x128xf32> to vector<8x128xf32>
    %5 = arith.addf %2, %4 : vector<8x128xf32>
    %6 = math.tanh %5 : vector<8x128xf32>
    %c0_5 = arith.constant 0 : index
    %c0_6 = arith.constant 0 : index
    %7 = vector.load %arg5[%c0_5, %c0_6] : memref<128x4xf32, #tpu.memory_space<vmem>>, vector<128x4xf32>
    %cst_7 = arith.constant dense<0.000000e+00> : vector<8x4xf32>
    %8 = tpu.matmul %6, %7, %cst_7 {dimension_numbers = #tpu.dot_dimension_numbers<[1], [0], [0], [1], [0, 0, 1, 1], [], []>} : vector<8x128xf32>, vector<128x4xf32>, vector<8x4xf32> -> vector<8x4xf32>
    %c0_8 = arith.constant 0 : index
    %c0_9 = arith.constant 0 : index
    %9 = vector.load %arg6[%c0_8, %c0_9] : memref<8x4xf32, #tpu.memory_space<vmem>>, vector<8x4xf32>
    tpu.vector_store %arg6[%c0_8, %c0_9], %8 {strides = array<i32>} : memref<8x4xf32, #tpu.memory_space<vmem>>, vector<8x4xf32>,
    return
  }
  func.func @transform_0(%arg0: i32, %arg1: i32) -> (i32, i32) {
    %c0_i32 = arith.constant 0 : i32
    %c0_i32_0 = arith.constant 0 : i32
    return %arg0, %c0_i32 : i32, i32
  }
  func.func @transform_1(%arg0: i32, %arg1: i32) -> (i32, i32) {
    %c0_i32 = arith.constant 0 : i32
    %c0_i32_0 = arith.constant 0 : i32
    return %c0_i32, %arg1 : i32, i32
  }
  func.func @transform_2(%arg0: i32, %arg1: i32) -> (i32, i32) {
    %c0_i32 = arith.constant 0 : i32
    %c0_i32_0 = arith.constant 0 : i32
    return %c0_i32, %arg1 : i32, i32
  }
  func.func @transform_3(%arg0: i32, %arg1: i32) -> (i32, i32) {
    %c0_i32 = arith.constant 0 : i32
    %c0_i32_0 = arith.constant 0 : i32
    return %arg1, %c0_i32 : i32, i32
  }
  func.func @transform_4(%arg0: i32, %arg1: i32) -> (i32, i32) {
    %c0_i32 = arith.constant 0 : i32
    %c0_i32_0 = arith.constant 0 : i32
    return %arg0, %c0_i32 : i32, i32
  }
}

</mosaic_0001>

<bundles_post_ra>
// kernel: tpu_custom_call.1
= control target key start
LH: loop header
LB: loop body
LE: loop exit
PB: predicated region body
PF: predicated region fallthrough
CT: control target
= control target key end

     0   :  { %s719_s15 = smov 0   ;;  %s721_s16 = smov 0   ;;  %s816_s0 = inlined_call_operand.vmem [shape: f32[16,16], index: 0, kind: input, shape index: {}]   ;;  %s817_s1 = inlined_call_operand.vmem [shape: f32[16,128], index: 1, kind: input, shape index: {}]   ;;  %s818_s2 = inlined_call_operand.vmem [shape: f32[1,128], index: 2, kind: input, shape index: {}]   ;;  %s819_s3 = inlined_call_operand.vmem [shape: f32[128,4], index: 3, kind: input, shape index: {}]   ;;  %s820_s4 = inlined_call_operand.vmem [shape: f32[16,4], index: 4, kind: output, shape index: {}]  }
   0x1   :  { %s723_s17 = smov 0  }
   0x2 LB: > { %s26_s18 = sadd.s32 1, %s685_s16  ;;  %p542_p0 = scmp.ge.s32.totalorder %s689_s17, 1  ;;  %s689_s17 = sphi %s723_s17, %s14_s17   ;;  %s685_s16 = sphi %s721_s16, %s822_s16   ;;  %s681_s15 = sphi %s719_s15, %s821_s15  }
   0x3   : > { %p28_p1 = scmp.ge.s32.totalorder %s26_s18, 2  ;;  %p201_p2 = scmp.lt.s32.totalorder %s689_s17, 3 }
   0x5   : > { %s824_s18 = smov (%p28_p1, %s26_s18), 0  ;;  %p202_p3 = pnand %p542_p0, %p201_p2 }
   0x6   : > { %v259_v0 = vld [vmem:[%s817_s1] sm:$0xff] (!%p202_p3)  ;;  %v260_v1 = vld [vmem:[%s817_s1 + $0x8] sm:$0xff] (!%p202_p3)  ;;  %p237_p4 = scmp.lt.s32.totalorder (!%p202_p3), %s681_s15, 1  ;;  %v691_v2 = vmov (!%p202_p3), 0.0|0.0   ;;  %vm692_vm0 = vmmov (!%p202_p3), 0   ;;  %v693_v4 = vmov (!%p202_p3), 0.0  }
   0x7   : > { %205 = sbr.rel (%p202_p3) target bundleno = 456 (0x1c8), region = 36  ;;  %611 = vmatprep.subr.bf16.mxu0 (!%p202_p3), %v691_v2  ;;  %v612_v3 = vpack.c.bf16 (!%p202_p3), %v260_v1, %v259_v0  ;;  %573 = vmatprep.mubr.msk.f32.mxu0 (!%p202_p3), %vm692_vm0, %v693_v4  ;;  %v343_v5 = vld [vmem:[%s819_s3] sm:$0xff] (!%p202_p3)  ;;  %v344_v6 = vld [vmem:[%s819_s3 + $0x8] sm:$0xff] (!%p202_p3)  ;;  %v345_v7 = vld [vmem:[%s819_s3 + $0x10] sm:$0xff] (!%p202_p3)  ;;  %vm268_vm1 = vcmask (!%p202_p3), 130048   ;;  %vm429_vm2 = vcmask (!%p202_p3), 31744  }
   0x8   : > { %614 = vmatprep.subr.bf16.mxu1 (!%p202_p3), %v691_v2  ;;  %v615_v8 = vpack.c.bf16 (!%p202_p3), %v344_v6, %v343_v5  ;;  %v346_v9 = vld [vmem:[%s819_s3 + $0x18] sm:$0xff] (!%p202_p3)  ;;  %608 = vmatprep.mubr.msk.f32.mxu1 (!%p202_p3), %vm692_vm0, %v693_v4  ;;  %v347_v11 = vld [vmem:[%s819_s3 + $0x20] sm:$0xff] (!%p202_p3)  ;;  %v348_v12 = vld [vmem:[%s819_s3 + $0x28] sm:$0xff] (!%p202_p3) }
   0x9   : > { %613 = vmatpush3.bf16.msra.mxu0 (!%p202_p3), %v612_v3  ;;  %v618_v10 = vpack.c.bf16 (!%p202_p3), %v346_v9, %v345_v7  ;;  %v621_v14 = vpack.c.bf16 (!%p202_p3), %v348_v12, %v347_v11  ;;  %v349_v15 = vld [vmem:[%s819_s3 + $0x30] sm:$0xff] (!%p202_p3)  ;;  %v350_v16 = vld [vmem:[%s819_s3 + $0x38] sm:$0xff] (!%p202_p3)  ;;  %v351_v18 = vld [vmem:[%s819_s3 + $0x40] sm:$0xff] (!%p202_p3) }
   0xa   : > { %616 = vmatpush3.bf16.msra.mxu1 (!%p202_p3), %v615_v8  ;;  %v624_v17 = vpack.c.bf16 (!%p202_p3), %v350_v16, %v349_v15  ;;  %v352_v19 = vld [vmem:[%s819_s3 + $0x48] sm:$0xff] (!%p202_p3)  ;;  %v353_v21 = vld [vmem:[%s819_s3 + $0x50] sm:$0xff] (!%p202_p3)  ;;  %v354_v22 = vld [vmem:[%s819_s3 + $0x58] sm:$0xff] (!%p202_p3) }
   0xb   : > { %617 = vmatprep.subr.bf16.mxu1 (!%p202_p3), %v691_v2  ;;  %v627_v20 = vpack.c.bf16 (!%p202_p3), %v352_v19, %v351_v18  ;;  %v630_v23 = vpack.c.bf16 (!%p202_p3), %v354_v22, %v353_v21  ;;  %v355_v24 = vld [vmem:[%s819_s3 + $0x60] sm:$0xff] (!%p202_p3)  ;;  %v356_v25 = vld [vmem:[%s819_s3 + $0x68] sm:$0xff] (!%p202_p3)  ;;  %v357_v27 = vld [vmem:[%s819_s3 + $0x70] sm:$0xff] (!%p202_p3) }
   0xc   : > { %v633_v26 = vpack.c.bf16 (!%p202_p3), %v356_v25, %v355_v24  ;;  %v358_v28 = vld [vmem:[%s819_s3 + $0x78] sm:$0xff] (!%p202_p3)  ;;  %v545_v30 = vld [vmem:[%s818_s2] ss:$0 sm:$0xff] (!%p202_p3) }
   0xd   : > { %v636_v29 = vpack.c.bf16 (!%p202_p3), %v358_v28, %v357_v27 }
   0xe   : > { %s826_s15 = smov (!%p237_p4, %s681_s15), 1  ;;  %619 = vmatpush3.bf16.msra.mxu1 %v618_v10 }
   0xf   : > { %s543_s5 = sshll.u32 %s826_s15, 3  ;;  %620 = vmatprep.subr.bf16.mxu1 %v691_v2 }
  0x10   : > { %s240_s8 = scalar_lea.vmem %s816_s0, %s543_s5  ;;  %s257_s20 = scalar_lea.vmem %s820_s4, %s543_s5 }
  0x11   : > { %v258_v13 = vld [vmem:[%s240_s8] sm:$0xff] }
  0x12   : > { %574 = vmatmul.mubr.msk.f32.vlgmr.msra.gmra.mrb[0].mxu0 %vm268_vm1, %v258_v13  ;;  %622 = vmatpush3.bf16.msra.mxu1 %v621_v14 }
  0x13   : > { %623 = vmatprep.subr.bf16.mxu1 %v691_v2 }
  0x16   : > { %625 = vmatpush3.bf16.msra.mxu1 %v624_v17 }
  0x17   : > { %626 = vmatprep.subr.bf16.mxu1 %v691_v2 }
  0x1a   : > { %628 = vmatpush3.bf16.msra.mxu1 %v627_v20 }
  0x1b   : > { %629 = vmatprep.subr.bf16.mxu1 %v691_v2 }
  0x1e   : > { %631 = vmatpush3.bf16.msra.mxu1 %v630_v23 }
  0x1f   : > { %632 = vmatprep.subr.bf16.mxu1 %v691_v2 }
  0x22   : > { %634 = vmatpush3.bf16.msra.mxu1 %v633_v26 }
  0x23   : > { %635 = vmatprep.subr.bf16.mxu1 %v691_v2 }
  0x26   : > { %637 = vmatpush3.bf16.msra.mxu1 %v636_v29 }
  0xe5   : > { %v338_v31 = vpop.f32.mrb[0].mxu0 }
  0xe6   : > { %v339_v32 = vadd.f32 %v545_v30, %v338_v31  ;;  %v575_v33 = vpop.f32.mrb[1].mxu0 }
  0xe8   : > { %665 = vtanh.f32 %v339_v32 }
  0xf2   : > { %v666_v34 = vpop.eup %665 }
  0xf3   : > { %609 = vmatmul.mubr.f32.vlgmr.msra.gmra.mrb[0].mxu1 %v666_v34 }
 0x1c6   : > { %v425_v35 = vpop.f32.mrb[0].mxu1 }
 0x1c7   : > { %430 = vst.msk [vmem:[%s257_s20] sm:$0xff] %vm429_vm2, %v425_v35  ;;  %v610_v36 = vpop.f32.mrb[1].mxu1 }
 0x1c8 PF: > { %s14_s17 = sadd.s32 1, %s689_s17   ;;  %s821_s15 = smov %s685_s16 }
 0x1c9   : > { %p11_p5 = scmp.ge.s32.totalorder %s14_s17, 4   ;;  %s822_s16 = smov %s824_s18 }
 0x1cb   :  { %13 = sbr.rel (!%p11_p5) target bundleno = 2 (0x2), region = 75 }

// kernel: tpu_custom_call.1
= control target key start
LH: loop header
LB: loop body
LE: loop exit
PB: predicated region body
PF: predicated region fallthrough
CT: control target
= control target key end

     0   :  { %s719_s15 = smov 0   ;;  %s721_s16 = smov 0   ;;  %s816_s0 = inlined_call_operand.vmem [shape: f32[16,16], index: 0, kind: input, shape index: {}]   ;;  %s817_s1 = inlined_call_operand.vmem [shape: f32[16,128], index: 1, kind: input, shape index: {}]   ;;  %s818_s2 = inlined_call_operand.vmem [shape: f32[1,128], index: 2, kind: input, shape index: {}]   ;;  %s819_s3 = inlined_call_operand.vmem [shape: f32[128,4], index: 3, kind: input, shape index: {}]   ;;  %s820_s4 = inlined_call_operand.vmem [shape: f32[16,4], index: 4, kind: output, shape index: {}]  }
   0x1   :  { %s723_s17 = smov 0  }
   0x2 LB: > { %s26_s18 = sadd.s32 1, %s685_s16  ;;  %p542_p0 = scmp.ge.s32.totalorder %s689_s17, 1  ;;  %s689_s17 = sphi %s723_s17, %s14_s17   ;;  %s685_s16 = sphi %s721_s16, %s822_s16   ;;  %s681_s15 = sphi %s719_s15, %s821_s15  }
   0x3   : > { %p28_p1 = scmp.ge.s32.totalorder %s26_s18, 2  ;;  %p201_p2 = scmp.lt.s32.totalorder %s689_s17, 3 }
   0x5   : > { %s824_s18 = smov (%p28_p1, %s26_s18), 0  ;;  %p202_p3 = pnand %p542_p0, %p201_p2 }
   0x6   : > { %v259_v0 = vld [vmem:[%s817_s1] sm:$0xff] (!%p202_p3)  ;;  %v260_v1 = vld [vmem:[%s817_s1 + $0x8] sm:$0xff] (!%p202_p3)  ;;  %p237_p4 = scmp.lt.s32.totalorder (!%p202_p3), %s681_s15, 1  ;;  %v691_v2 = vmov (!%p202_p3), 0.0|0.0   ;;  %vm692_vm0 = vmmov (!%p202_p3), 0   ;;  %v693_v4 = vmov (!%p202_p3), 0.0  }
   0x7   : > { %205 = sbr.rel (%p202_p3) target bundleno = 456 (0x1c8), region = 36  ;;  %611 = vmatprep.subr.bf16.mxu0 (!%p202_p3), %v691_v2  ;;  %v612_v3 = vpack.c.bf16 (!%p202_p3), %v260_v1, %v259_v0  ;;  %573 = vmatprep.mubr.msk.f32.mxu0 (!%p202_p3), %vm692_vm0, %v693_v4  ;;  %v343_v5 = vld [vmem:[%s819_s3] sm:$0xff] (!%p202_p3)  ;;  %v344_v6 = vld [vmem:[%s819_s3 + $0x8] sm:$0xff] (!%p202_p3)  ;;  %v345_v7 = vld [vmem:[%s819_s3 + $0x10] sm:$0xff] (!%p202_p3)  ;;  %vm268_vm1 = vcmask (!%p202_p3), 130048   ;;  %vm429_vm2 = vcmask (!%p202_p3), 31744  }
   0x8   : > { %614 = vmatprep.subr.bf16.mxu1 (!%p202_p3), %v691_v2  ;;  %v615_v8 = vpack.c.bf16 (!%p202_p3), %v344_v6, %v343_v5  ;;  %v346_v9 = vld [vmem:[%s819_s3 + $0x18] sm:$0xff] (!%p202_p3)  ;;  %608 = vmatprep.mubr.msk.f32.mxu1 (!%p202_p3), %vm692_vm0, %v693_v4  ;;  %v347_v11 = vld [vmem:[%s819_s3 + $0x20] sm:$0xff] (!%p202_p3)  ;;  %v348_v12 = vld [vmem:[%s819_s3 + $0x28] sm:$0xff] (!%p202_p3) }
   0x9   : > { %613 = vmatpush3.bf16.msra.mxu0 (!%p202_p3), %v612_v3  ;;  %v618_v10 = vpack.c.bf16 (!%p202_p3), %v346_v9, %v345_v7  ;;  %v621_v14 = vpack.c.bf16 (!%p202_p3), %v348_v12, %v347_v11  ;;  %v349_v15 = vld [vmem:[%s819_s3 + $0x30] sm:$0xff] (!%p202_p3)  ;;  %v350_v16 = vld [vmem:[%s819_s3 + $0x38] sm:$0xff] (!%p202_p3)  ;;  %v351_v18 = vld [vmem:[%s819_s3 + $0x40] sm:$0xff] (!%p202_p3) }
   0xa   : > { %616 = vmatpush3.bf16.msra.mxu1 (!%p202_p3), %v615_v8  ;;  %v624_v17 = vpack.c.bf16 (!%p202_p3), %v350_v16, %v349_v15  ;;  %v352_v19 = vld [vmem:[%s819_s3 + $0x48] sm:$0xff] (!%p202_p3)  ;;  %v353_v21 = vld [vmem:[%s819_s3 + $0x50] sm:$0xff] (!%p202_p3)  ;;  %v354_v22 = vld [vmem:[%s819_s3 + $0x58] sm:$0xff] (!%p202_p3) }
   0xb   : > { %617 = vmatprep.subr.bf16.mxu1 (!%p202_p3), %v691_v2  ;;  %v627_v20 = vpack.c.bf16 (!%p202_p3), %v352_v19, %v351_v18  ;;  %v630_v23 = vpack.c.bf16 (!%p202_p3), %v354_v22, %v353_v21  ;;  %v355_v24 = vld [vmem:[%s819_s3 + $0x60] sm:$0xff] (!%p202_p3)  ;;  %v356_v25 = vld [vmem:[%s819_s3 + $0x68] sm:$0xff] (!%p202_p3)  ;;  %v357_v27 = vld [vmem:[%s819_s3 + $0x70] sm:$0xff] (!%p202_p3) }
   0xc   : > { %v633_v26 = vpack.c.bf16 (!%p202_p3), %v356_v25, %v355_v24  ;;  %v358_v28 = vld [vmem:[%s819_s3 + $0x78] sm:$0xff] (!%p202_p3)  ;;  %v545_v30 = vld [vmem:[%s818_s2] ss:$0 sm:$0xff] (!%p202_p3) }
   0xd   : > { %v636_v29 = vpack.c.bf16 (!%p202_p3), %v358_v28, %v357_v27 }
   0xe   : > { %s826_s15 = smov (!%p237_p4, %s681_s15), 1  ;;  %619 = vmatpush3.bf16.msra.mxu1 %v618_v10 }
   0xf   : > { %s543_s5 = sshll.u32 %s826_s15, 3  ;;  %620 = vmatprep.subr.bf16.mxu1 %v691_v2 }
  0x10   : > { %s240_s8 = scalar_lea.vmem %s816_s0, %s543_s5  ;;  %s257_s20 = scalar_lea.vmem %s820_s4, %s543_s5 }
  0x11   : > { %v258_v13 = vld [vmem:[%s240_s8] sm:$0xff] }
  0x12   : > { %574 = vmatmul.mubr.msk.f32.vlgmr.msra.gmra.mrb[0].mxu0 %vm268_vm1, %v258_v13  ;;  %622 = vmatpush3.bf16.msra.mxu1 %v621_v14 }
  0x13   : > { %623 = vmatprep.subr.bf16.mxu1 %v691_v2 }
  0x16   : > { %625 = vmatpush3.bf16.msra.mxu1 %v624_v17 }
  0x17   : > { %626 = vmatprep.subr.bf16.mxu1 %v691_v2 }
  0x1a   : > { %628 = vmatpush3.bf16.msra.mxu1 %v627_v20 }
  0x1b   : > { %629 = vmatprep.subr.bf16.mxu1 %v691_v2 }
  0x1e   : > { %631 = vmatpush3.bf16.msra.mxu1 %v630_v23 }
  0x1f   : > { %632 = vmatprep.subr.bf16.mxu1 %v691_v2 }
  0x22   : > { %634 = vmatpush3.bf16.msra.mxu1 %v633_v26 }
  0x23   : > { %635 = vmatprep.subr.bf16.mxu1 %v691_v2 }
  0x26   : > { %637 = vmatpush3.bf16.msra.mxu1 %v636_v29 }
  0xe5   : > { %v338_v31 = vpop.f32.mrb[0].mxu0 }
  0xe6   : > { %v339_v32 = vadd.f32 %v545_v30, %v338_v31  ;;  %v575_v33 = vpop.f32.mrb[1].mxu0 }
  0xe8   : > { %665 = vtanh.f32 %v339_v32 }
  0xf2   : > { %v666_v34 = vpop.eup %665 }
  0xf3   : > { %609 = vmatmul.mubr.f32.vlgmr.msra.gmra.mrb[0].mxu1 %v666_v34 }
 0x1c6   : > { %v425_v35 = vpop.f32.mrb[0].mxu1 }
 0x1c7   : > { %430 = vst.msk [vmem:[%s257_s20] sm:$0xff] %vm429_vm2, %v425_v35  ;;  %v610_v36 = vpop.f32.mrb[1].mxu1 }
 0x1c8 PF: > { %s14_s17 = sadd.s32 1, %s689_s17   ;;  %s821_s15 = smov %s685_s16 }
 0x1c9   : > { %p11_p5 = scmp.ge.s32.totalorder %s14_s17, 4   ;;  %s822_s16 = smov %s824_s18 }
 0x1cb   :  { %13 = sbr.rel (!%p11_p5) target bundleno = 2 (0x2), region = 75 }

</bundles_post_ra>
